<compile_context>
chip_gen: v5e
topology: v5e:2x2
jax: 0.10.0
libtpu: 0.0.40
codegen_flags: <defaults>
</compile_context>

<pallas_src>
import functools

import jax
import jax.numpy as jnp
from jax.experimental import pallas as pl
from jax.experimental.pallas import tpu as pltpu


NUM_LAYERS = 7  # 6 hidden layers (ReLU) + 1 output layer (no activation)


def _round_up(n: int, m: int) -> int:
    return ((n + m - 1) // m) * m


def make_dqn_kernel(out_widths):
    """out_widths: tuple of padded output width (multiple of 128) per layer."""

    def dqn_kernel(x_ref, *rest):
        out_ref = rest[-1]
        b_ref = rest[-2]          # (NUM_LAYERS, P) f32, all biases packed
        w_refs = rest[:-2]        # per-layer bf16 weights

        # In-kernel cast; x block keeps its native (unpadded) feature width.
        h = x_ref[...].astype(jnp.bfloat16)            # (tb, in_size) bf16
        for layer in range(NUM_LAYERS):
            w = w_refs[layer][...]                     # (k, out_p) bf16
            # MXU matmul with f32 accumulation.
            acc = jnp.dot(h, w, preferred_element_type=jnp.float32)
            bw = out_widths[layer]                     # static, multiple of 128
            acc = acc + b_ref[layer:layer + 1, :bw]    # f32 bias add, (1, bw)
            if layer < NUM_LAYERS - 1:
                h = jnp.maximum(acc, 0.0).astype(jnp.bfloat16)  # ReLU on VPU
            else:
                out_ref[...] = acc.astype(out_ref.dtype)

    return dqn_kernel


def prepare_params(params):
    """Pad weights to lane-dense bf16 tiles and pack biases into one array.

    params: list of (W, b) with W shape (in, out) f32 and b shape (1, out) f32
            (already transposed from PyTorch's (out, in) layout).
    Returns (weights_tuple_bf16, biases_packed_f32, dims_padded).
    """
    in_size = params[0][0].shape[0]
    dims = [in_size] + [w.shape[1] for w, _ in params]
    # Input feature dim stays unpadded (x is fed at its native width); all
    # hidden/output feature dims are padded to 128 lanes.
    dims_p = (in_size,) + tuple(_round_up(d, 128) for d in dims[1:])

    weights = []
    for i, (w, _) in enumerate(params):
        in_d, out_d = w.shape
        w_pad = jnp.zeros((dims_p[i], dims_p[i + 1]), jnp.float32)
        w_pad = w_pad.at[:in_d, :out_d].set(w)
        weights.append(w_pad.astype(jnp.bfloat16))

    p_max = max(dims_p[1:])
    b_packed = jnp.zeros((NUM_LAYERS, p_max), jnp.float32)
    for i, (_, b) in enumerate(params):
        b_packed = b_packed.at[i, : b.shape[1]].set(b[0])

    return tuple(weights), b_packed, dims_p


@functools.partial(
    jax.jit,
    static_argnames=("dims_p", "out_size", "batch_tile", "out_dtype"),
)
def _dqn_forward_impl(x, weights, b_packed, *, dims_p, out_size, batch_tile,
                      out_dtype):
    batch, in_size = x.shape
    assert in_size == dims_p[0], (in_size, dims_p)
    out_p = dims_p[-1]

    # Batch tile: clamp to [8, 1024] and to a multiple of 8 sublanes.
    batch_tile = min(max(int(batch_tile), 8), 1024)
    tb = min(batch_tile, _round_up(batch, 8))
    tb = max(8, (tb // 8) * 8)
    padded_batch = _round_up(batch, tb)
    # v7x: at large batch keep >= 2 grid steps so ("parallel",) can shard the
    # batch across both TensorCores (at small batch it doesn't matter).
    if padded_batch // tb == 1 and tb >= 512:
        tb = max(256, (tb // 16) * 8)   # ~halve, keep a multiple of 8
        padded_batch = _round_up(batch, tb)

    # Only pad the batch dim (cheap, native feature width) when needed.
    if padded_batch != batch:
        x = jnp.pad(x, ((0, padded_batch - batch), (0, 0)))

    grid = (padded_batch // tb,)

    in_specs = [pl.BlockSpec((tb, in_size), lambda i: (i, 0))]
    # Weights / packed biases: full-array blocks, resident for every grid step.
    in_specs += [pl.BlockSpec(w.shape, lambda i: (0, 0)) for w in weights]
    in_specs += [pl.BlockSpec(b_packed.shape, lambda i: (0, 0))]
    out_specs = pl.BlockSpec((tb, out_p), lambda i: (i, 0))

    kernel = make_dqn_kernel(tuple(dims_p[1:]))

    out_padded = pl.pallas_call(
        kernel,
        out_shape=jax.ShapeDtypeStruct((padded_batch, out_p), out_dtype),
        grid=grid,
        in_specs=in_specs,
        out_specs=out_specs,
        compiler_params=pltpu.CompilerParams(
            dimension_semantics=("parallel",),
            # <4 MiB used even at tb=1024; stays safe on v7x's smaller VMEM.
            vmem_limit_bytes=32 * 1024 * 1024,
        ),
    )(x, *weights, b_packed)

    return out_padded[:batch, :out_size]


def dqn_forward(x, prepared, out_size, *, batch_tile=512,
                out_dtype=jnp.float32):
    weights, b_packed, dims_p = prepared
    return _dqn_forward_impl(
        x, weights, b_packed,
        dims_p=dims_p, out_size=out_size, batch_tile=batch_tile,
        out_dtype=out_dtype,
    )


def init_params(key, input_size, hidden_size, output_size):
    """Mimics PyTorch nn.Linear default init U[-1/sqrt(fan_in), +1/sqrt(fan_in)]."""
    sizes = [input_size] + [hidden_size] * 6 + [output_size]
    params = []
    for i in range(NUM_LAYERS):
        fan_in, fan_out = sizes[i], sizes[i + 1]
        key, kw, kb = jax.random.split(key, 3)
        bound = 1.0 / jnp.sqrt(jnp.float32(fan_in))
        # PyTorch weight is (out, in); build that way, transpose to (in, out).
        w_torch_layout = jax.random.uniform(
            kw, (fan_out, fan_in), jnp.float32, minval=-bound, maxval=bound
        )
        b = jax.random.uniform(
            kb, (1, fan_out), jnp.float32, minval=-bound, maxval=bound
        )
        params.append((w_torch_layout.T, b))
    return params


def dqn_reference(x, params):
    """Pure-JAX reference that mirrors the kernel's bf16 quantization."""
    h = x
    for i, (w, b) in enumerate(params):
        h_b = h.astype(jnp.bfloat16).astype(jnp.float32)
        w_b = w.astype(jnp.bfloat16).astype(jnp.float32)
        h = h_b @ w_b + b
        if i < NUM_LAYERS - 1:
            h = jnp.maximum(h, 0.0)
    return h


if __name__ == "__main__":
    input_size, hidden_size, output_size = 16, 32, 4

    key = jax.random.PRNGKey(0)
    key, kx_small, kx_big = jax.random.split(key, 3)
    params = init_params(key, input_size, hidden_size, output_size)

    prepared = prepare_params(params)  # done once; reused across forward calls

    # Small batch (per-env-step inference shape).
    x_small = jax.random.normal(kx_small, (8, input_size), jnp.float32)
    out_small = jax.block_until_ready(
        dqn_forward(x_small, prepared, output_size)
    )
    ref_small = dqn_reference(x_small, params)
    assert out_small.shape == (8, output_size)
    assert jnp.allclose(out_small, ref_small, atol=2e-3, rtol=2e-3), float(
        jnp.max(jnp.abs(out_small - ref_small))
    )

    # Large batch (replay-buffer training shape) -- exercises batch padding,
    # the 512-row tile and a multi-step "parallel" grid.
    x_big = jax.random.normal(kx_big, (1000, input_size), jnp.float32)
    out_big = jax.block_until_ready(
        dqn_forward(x_big, prepared, output_size)
    )
    ref_big = dqn_reference(x_big, params)
    assert out_big.shape == (1000, output_size)
    assert jnp.allclose(out_big, ref_big, atol=2e-3, rtol=2e-3), float(
        jnp.max(jnp.abs(out_big - ref_big))
    )

    print("KERNEL_OK")
</pallas_src>

<mosaic_0001>
module attributes {stable_mosaic.version = 11 : i64} {
  func.func @dqn_kernel(%arg0: i32, %arg1: memref<8x16xf32, #tpu.memory_space<vmem>>, %arg2: memref<16x128xbf16, #tpu.memory_space<vmem>>, %arg3: memref<128x128xbf16, #tpu.memory_space<vmem>>, %arg4: memref<128x128xbf16, #tpu.memory_space<vmem>>, %arg5: memref<128x128xbf16, #tpu.memory_space<vmem>>, %arg6: memref<128x128xbf16, #tpu.memory_space<vmem>>, %arg7: memref<128x128xbf16, #tpu.memory_space<vmem>>, %arg8: memref<128x128xbf16, #tpu.memory_space<vmem>>, %arg9: memref<7x128xf32, #tpu.memory_space<vmem>>, %arg10: memref<8x128xf32, #tpu.memory_space<vmem>>) attributes {dimension_semantics = [#tpu.dimension_semantics<parallel>], iteration_bounds = array<i64: 1>, scalar_prefetch = 0 : i64, scratch_operands = 0 : i64, tpu.core_type = #tpu.core_type<tc>, window_params = [{transform_indices = @transform_0, window_bounds = array<i64: 8, 16>}, {pipeline_mode = #tpu.pipeline_mode<synchronous>, transform_indices = @transform_1, window_bounds = array<i64: 16, 128>}, {pipeline_mode = #tpu.pipeline_mode<synchronous>, transform_indices = @transform_2, window_bounds = array<i64: 128, 128>}, {pipeline_mode = #tpu.pipeline_mode<synchronous>, transform_indices = @transform_3, window_bounds = array<i64: 128, 128>}, {pipeline_mode = #tpu.pipeline_mode<synchronous>, transform_indices = @transform_4, window_bounds = array<i64: 128, 128>}, {pipeline_mode = #tpu.pipeline_mode<synchronous>, transform_indices = @transform_5, window_bounds = array<i64: 128, 128>}, {pipeline_mode = #tpu.pipeline_mode<synchronous>, transform_indices = @transform_6, window_bounds = array<i64: 128, 128>}, {pipeline_mode = #tpu.pipeline_mode<synchronous>, transform_indices = @transform_7, window_bounds = array<i64: 128, 128>}, {pipeline_mode = #tpu.pipeline_mode<synchronous>, transform_indices = @transform_8, window_bounds = array<i64: 7, 128>}, {transform_indices = @transform_9, window_bounds = array<i64: 8, 128>}]} {
    %c0 = arith.constant 0 : index
    %c0_0 = arith.constant 0 : index
    %0 = vector.load %arg1[%c0, %c0_0] : memref<8x16xf32, #tpu.memory_space<vmem>>, vector<8x16xf32>
    %1 = arith.truncf %0 : vector<8x16xf32> to vector<8x16xbf16>
    %c0_1 = arith.constant 0 : index
    %c0_2 = arith.constant 0 : index
    %2 = vector.load %arg2[%c0_1, %c0_2] : memref<16x128xbf16, #tpu.memory_space<vmem>>, vector<16x128xbf16>
    %cst = arith.constant dense<0.000000e+00> : vector<8x128xf32>
    %3 = tpu.matmul %1, %2, %cst {dimension_numbers = #tpu.dot_dimension_numbers<[1], [0], [0], [1], [0, 0, 1, 1], [], []>} : vector<8x16xbf16>, vector<16x128xbf16>, vector<8x128xf32> -> vector<8x128xf32>
    %c0_3 = arith.constant 0 : index
    %c0_4 = arith.constant 0 : index
    %4 = vector.load %arg9[%c0_3, %c0_4] : memref<7x128xf32, #tpu.memory_space<vmem>>, vector<1x128xf32>
    %5 = vector.broadcast %4 : vector<1x128xf32> to vector<8x128xf32>
    %6 = arith.addf %3, %5 : vector<8x128xf32>
    %cst_5 = arith.constant 0.000000e+00 : f32
    %7 = vector.broadcast %cst_5 : f32 to vector<8x128xf32>
    %8 = arith.maximumf %6, %7 : vector<8x128xf32>
    %9 = arith.truncf %8 : vector<8x128xf32> to vector<8x128xbf16>
    %c0_6 = arith.constant 0 : index
    %c0_7 = arith.constant 0 : index
    %10 = vector.load %arg3[%c0_6, %c0_7] : memref<128x128xbf16, #tpu.memory_space<vmem>>, vector<128x128xbf16>
    %cst_8 = arith.constant dense<0.000000e+00> : vector<8x128xf32>
    %11 = tpu.matmul %9, %10, %cst_8 {dimension_numbers = #tpu.dot_dimension_numbers<[1], [0], [0], [1], [0, 0, 1, 1], [], []>} : vector<8x128xbf16>, vector<128x128xbf16>, vector<8x128xf32> -> vector<8x128xf32>
    %c1 = arith.constant 1 : index
    %c0_9 = arith.constant 0 : index
    %12 = vector.load %arg9[%c1, %c0_9] : memref<7x128xf32, #tpu.memory_space<vmem>>, vector<1x128xf32>
    %13 = vector.broadcast %12 : vector<1x128xf32> to vector<8x128xf32>
    %14 = arith.addf %11, %13 : vector<8x128xf32>
    %cst_10 = arith.constant 0.000000e+00 : f32
    %15 = vector.broadcast %cst_10 : f32 to vector<8x128xf32>
    %16 = arith.maximumf %14, %15 : vector<8x128xf32>
    %17 = arith.truncf %16 : vector<8x128xf32> to vector<8x128xbf16>
    %c0_11 = arith.constant 0 : index
    %c0_12 = arith.constant 0 : index
    %18 = vector.load %arg4[%c0_11, %c0_12] : memref<128x128xbf16, #tpu.memory_space<vmem>>, vector<128x128xbf16>
    %cst_13 = arith.constant dense<0.000000e+00> : vector<8x128xf32>
    %19 = tpu.matmul %17, %18, %cst_13 {dimension_numbers = #tpu.dot_dimension_numbers<[1], [0], [0], [1], [0, 0, 1, 1], [], []>} : vector<8x128xbf16>, vector<128x128xbf16>, vector<8x128xf32> -> vector<8x128xf32>
    %c2 = arith.constant 2 : index
    %c0_14 = arith.constant 0 : index
    %20 = vector.load %arg9[%c2, %c0_14] : memref<7x128xf32, #tpu.memory_space<vmem>>, vector<1x128xf32>
    %21 = vector.broadcast %20 : vector<1x128xf32> to vector<8x128xf32>
    %22 = arith.addf %19, %21 : vector<8x128xf32>
    %cst_15 = arith.constant 0.000000e+00 : f32
    %23 = vector.broadcast %cst_15 : f32 to vector<8x128xf32>
    %24 = arith.maximumf %22, %23 : vector<8x128xf32>
    %25 = arith.truncf %24 : vector<8x128xf32> to vector<8x128xbf16>
    %c0_16 = arith.constant 0 : index
    %c0_17 = arith.constant 0 : index
    %26 = vector.load %arg5[%c0_16, %c0_17] : memref<128x128xbf16, #tpu.memory_space<vmem>>, vector<128x128xbf16>
    %cst_18 = arith.constant dense<0.000000e+00> : vector<8x128xf32>
    %27 = tpu.matmul %25, %26, %cst_18 {dimension_numbers = #tpu.dot_dimension_numbers<[1], [0], [0], [1], [0, 0, 1, 1], [], []>} : vector<8x128xbf16>, vector<128x128xbf16>, vector<8x128xf32> -> vector<8x128xf32>
    %c3 = arith.constant 3 : index
    %c0_19 = arith.constant 0 : index
    %28 = vector.load %arg9[%c3, %c0_19] : memref<7x128xf32, #tpu.memory_space<vmem>>, vector<1x128xf32>
    %29 = vector.broadcast %28 : vector<1x128xf32> to vector<8x128xf32>
    %30 = arith.addf %27, %29 : vector<8x128xf32>
    %cst_20 = arith.constant 0.000000e+00 : f32
    %31 = vector.broadcast %cst_20 : f32 to vector<8x128xf32>
    %32 = arith.maximumf %30, %31 : vector<8x128xf32>
    %33 = arith.truncf %32 : vector<8x128xf32> to vector<8x128xbf16>
    %c0_21 = arith.constant 0 : index
    %c0_22 = arith.constant 0 : index
    %34 = vector.load %arg6[%c0_21, %c0_22] : memref<128x128xbf16, #tpu.memory_space<vmem>>, vector<128x128xbf16>
    %cst_23 = arith.constant dense<0.000000e+00> : vector<8x128xf32>
    %35 = tpu.matmul %33, %34, %cst_23 {dimension_numbers = #tpu.dot_dimension_numbers<[1], [0], [0], [1], [0, 0, 1, 1], [], []>} : vector<8x128xbf16>, vector<128x128xbf16>, vector<8x128xf32> -> vector<8x128xf32>
    %c4 = arith.constant 4 : index
    %c0_24 = arith.constant 0 : index
    %36 = vector.load %arg9[%c4, %c0_24] : memref<7x128xf32, #tpu.memory_space<vmem>>, vector<1x128xf32>
    %37 = vector.broadcast %36 : vector<1x128xf32> to vector<8x128xf32>
    %38 = arith.addf %35, %37 : vector<8x128xf32>
    %cst_25 = arith.constant 0.000000e+00 : f32
    %39 = vector.broadcast %cst_25 : f32 to vector<8x128xf32>
    %40 = arith.maximumf %38, %39 : vector<8x128xf32>
    %41 = arith.truncf %40 : vector<8x128xf32> to vector<8x128xbf16>
    %c0_26 = arith.constant 0 : index
    %c0_27 = arith.constant 0 : index
    %42 = vector.load %arg7[%c0_26, %c0_27] : memref<128x128xbf16, #tpu.memory_space<vmem>>, vector<128x128xbf16>
    %cst_28 = arith.constant dense<0.000000e+00> : vector<8x128xf32>
    %43 = tpu.matmul %41, %42, %cst_28 {dimension_numbers = #tpu.dot_dimension_numbers<[1], [0], [0], [1], [0, 0, 1, 1], [], []>} : vector<8x128xbf16>, vector<128x128xbf16>, vector<8x128xf32> -> vector<8x128xf32>
    %c5 = arith.constant 5 : index
    %c0_29 = arith.constant 0 : index
    %44 = vector.load %arg9[%c5, %c0_29] : memref<7x128xf32, #tpu.memory_space<vmem>>, vector<1x128xf32>
    %45 = vector.broadcast %44 : vector<1x128xf32> to vector<8x128xf32>
    %46 = arith.addf %43, %45 : vector<8x128xf32>
    %cst_30 = arith.constant 0.000000e+00 : f32
    %47 = vector.broadcast %cst_30 : f32 to vector<8x128xf32>
    %48 = arith.maximumf %46, %47 : vector<8x128xf32>
    %49 = arith.truncf %48 : vector<8x128xf32> to vector<8x128xbf16>
    %c0_31 = arith.constant 0 : index
    %c0_32 = arith.constant 0 : index
    %50 = vector.load %arg8[%c0_31, %c0_32] : memref<128x128xbf16, #tpu.memory_space<vmem>>, vector<128x128xbf16>
    %cst_33 = arith.constant dense<0.000000e+00> : vector<8x128xf32>
    %51 = tpu.matmul %49, %50, %cst_33 {dimension_numbers = #tpu.dot_dimension_numbers<[1], [0], [0], [1], [0, 0, 1, 1], [], []>} : vector<8x128xbf16>, vector<128x128xbf16>, vector<8x128xf32> -> vector<8x128xf32>
    %c6 = arith.constant 6 : index
    %c0_34 = arith.constant 0 : index
    %52 = vector.load %arg9[%c6, %c0_34] : memref<7x128xf32, #tpu.memory_space<vmem>>, vector<1x128xf32>
    %53 = vector.broadcast %52 : vector<1x128xf32> to vector<8x128xf32>
    %54 = arith.addf %51, %53 : vector<8x128xf32>
    %c0_35 = arith.constant 0 : index
    %c0_36 = arith.constant 0 : index
    %55 = vector.load %arg10[%c0_35, %c0_36] : memref<8x128xf32, #tpu.memory_space<vmem>>, vector<8x128xf32>
    tpu.vector_store %arg10[%c0_35, %c0_36], %54 {strides = array<i32>} : memref<8x128xf32, #tpu.memory_space<vmem>>, vector<8x128xf32>,
    return
  }
  func.func @transform_0(%arg0: i32) -> (i32, i32) {
    %c0_i32 = arith.constant 0 : i32
    %c0_i32_0 = arith.constant 0 : i32
    return %arg0, %c0_i32 : i32, i32
  }
  func.func @transform_1(%arg0: i32) -> (i32, i32) {
    %c0_i32 = arith.constant 0 : i32
    %c0_i32_0 = arith.constant 0 : i32
    %c0_i32_1 = arith.constant 0 : i32
    return %c0_i32, %c0_i32_0 : i32, i32
  }
  func.func @transform_2(%arg0: i32) -> (i32, i32) {
    %c0_i32 = arith.constant 0 : i32
    %c0_i32_0 = arith.constant 0 : i32
    %c0_i32_1 = arith.constant 0 : i32
    return %c0_i32, %c0_i32_0 : i32, i32
  }
  func.func @transform_3(%arg0: i32) -> (i32, i32) {
    %c0_i32 = arith.constant 0 : i32
    %c0_i32_0 = arith.constant 0 : i32
    %c0_i32_1 = arith.constant 0 : i32
    return %c0_i32, %c0_i32_0 : i32, i32
  }
  func.func @transform_4(%arg0: i32) -> (i32, i32) {
    %c0_i32 = arith.constant 0 : i32
    %c0_i32_0 = arith.constant 0 : i32
    %c0_i32_1 = arith.constant 0 : i32
    return %c0_i32, %c0_i32_0 : i32, i32
  }
  func.func @transform_5(%arg0: i32) -> (i32, i32) {
    %c0_i32 = arith.constant 0 : i32
    %c0_i32_0 = arith.constant 0 : i32
    %c0_i32_1 = arith.constant 0 : i32
    return %c0_i32, %c0_i32_0 : i32, i32
  }
  func.func @transform_6(%arg0: i32) -> (i32, i32) {
    %c0_i32 = arith.constant 0 : i32
    %c0_i32_0 = arith.constant 0 : i32
    %c0_i32_1 = arith.constant 0 : i32
    return %c0_i32, %c0_i32_0 : i32, i32
  }
  func.func @transform_7(%arg0: i32) -> (i32, i32) {
    %c0_i32 = arith.constant 0 : i32
    %c0_i32_0 = arith.constant 0 : i32
    %c0_i32_1 = arith.constant 0 : i32
    return %c0_i32, %c0_i32_0 : i32, i32
  }
  func.func @transform_8(%arg0: i32) -> (i32, i32) {
    %c0_i32 = arith.constant 0 : i32
    %c0_i32_0 = arith.constant 0 : i32
    %c0_i32_1 = arith.constant 0 : i32
    return %c0_i32, %c0_i32_0 : i32, i32
  }
  func.func @transform_9(%arg0: i32) -> (i32, i32) {
    %c0_i32 = arith.constant 0 : i32
    %c0_i32_0 = arith.constant 0 : i32
    return %arg0, %c0_i32 : i32, i32
  }
}

</mosaic_0001>

<bundles_post_ra>
// kernel: _dqn_forward_impl.1
= control target key start
LH: loop header
LB: loop body
LE: loop exit
PB: predicated region body
PF: predicated region fallthrough
CT: control target
= control target key end

     0   :  { %14 = vsyncpa [#allocation3], 0  ;;  %s1296_s0 = inlined_call_operand.hbm [shape: f32[8,16], index: 0, kind: input, shape index: {}]   ;;  %s1297_s1 = inlined_call_operand.hbm [shape: bf16[16,128], index: 1, kind: input, shape index: {}]   ;;  %s1298_s2 = inlined_call_operand.hbm [shape: bf16[128,128], index: 2, kind: input, shape index: {}]   ;;  %s1299_s3 = inlined_call_operand.hbm [shape: bf16[128,128], index: 3, kind: input, shape index: {}]   ;;  %s1300_s4 = inlined_call_operand.hbm [shape: bf16[128,128], index: 4, kind: input, shape index: {}]   ;;  %s1301_s5 = inlined_call_operand.hbm [shape: bf16[128,128], index: 5, kind: input, shape index: {}]   ;;  %s1302_s6 = inlined_call_operand.hbm [shape: bf16[128,128], index: 6, kind: input, shape index: {}]   ;;  %s1303_s7 = inlined_call_operand.hbm [shape: bf16[128,128], index: 7, kind: input, shape index: {}]   ;;  %s1304_s8 = inlined_call_operand.hbm [shape: f32[7,128], index: 8, kind: input, shape index: {}]   ;;  %s1305_s9 = inlined_call_operand.vmem [shape: f32[8,128], index: 9, kind: output, shape index: {}]  }
   0x1   :  { %15 = vsyncpa [#allocation5], 0 }
   0x2   :  { %16 = vsyncpa [#allocation8], 0 }
   0x3   :  { %17 = vsyncpa [#allocation11], 0  ;;  %s34_s11 = sshll.u32 %s1297_s1, 4  ;;  %s35_s11 = int_to_ptr.hbm [resolvable:$true] %s34_s11 }
   0x4   :  { %18 = vsyncpa [#allocation14], 0  ;;  %s1184_s12 = smov [#allocation4]   ;;  %s60_s16 = sshll.u32 %s1299_s3, 4  ;;  %s61_s16 = int_to_ptr.hbm [resolvable:$true] %s60_s16 }
   0x5   :  { %s36_s13 = sshll.u32 %s1184_s12, 4  ;;  %s1185_s17 = smov 64   ;;  %s37_s13 = int_to_ptr.vmem [resolvable:$true] %s36_s13 }
   0x6   :  { %s1186_s18 = smov 4   ;;  %s1187_s19 = smov [#allocation7]  }
   0x7   :  { %42 = dma.hbm_to_vmem [thread:$0]  %s35_s11, 128, %s37_s13, [#allocation5], %s1185_s17, %s1185_s17, %s1186_s18  }
   0x8   :  { %s62_s20 = sshll.u32 %s1187_s19, 4  ;;  %s86_s22 = sshll.u32 %s1301_s5, 4  ;;  %s63_s20 = int_to_ptr.vmem [resolvable:$true] %s62_s20  ;;  %s87_s22 = int_to_ptr.hbm [resolvable:$true] %s86_s22 }
   0x9   :  { %68 = dma.hbm_to_vmem [thread:$0]  %s61_s16, 1024, %s63_s20, [#allocation8], %s1185_s17, %s1185_s17, %s1186_s18  }
   0xa   :  { %s112_s24 = sshll.u32 %s1303_s7, 4  ;;  %s1188_s25 = smov [#allocation10]   ;;  %s113_s24 = int_to_ptr.hbm [resolvable:$true] %s112_s24 }
   0xb   :  { %s88_s26 = sshll.u32 %s1188_s25, 4  ;;  %s1189_s27 = smov [#allocation13]   ;;  %s89_s26 = int_to_ptr.vmem [resolvable:$true] %s88_s26 }
   0xc   :  { %94 = dma.hbm_to_vmem [thread:$0]  %s87_s22, 1024, %s89_s26, [#allocation11], %s1185_s17, %s1185_s17, %s1186_s18  }
   0xd   :  { %s114_s5 = sshll.u32 %s1189_s27, 4  ;;  %s24_s30 = sshll.u32 %s1296_s0, 4  ;;  %s115_s5 = int_to_ptr.vmem [resolvable:$true] %s114_s5  ;;  %s25_s30 = int_to_ptr.hbm [resolvable:$true] %s24_s30 }
   0xe   :  { %120 = dma.hbm_to_vmem [thread:$0]  %s113_s24, 1024, %s115_s5, [#allocation14], %s1185_s17, %s1185_s17, %s1186_s18  }
   0xf   :  { %s47_s11 = sshll.u32 %s1298_s2, 4  ;;  %s1190_s12 = smov [#allocation2]   ;;  %s48_s11 = int_to_ptr.hbm [resolvable:$true] %s47_s11 }
  0x10   :  { %s26_s13 = sshll.u32 %s1190_s12, 4  ;;  %s1191_s14 = smov [#allocation6]   ;;  %s27_s13 = int_to_ptr.vmem [resolvable:$true] %s26_s13 }
  0x11   :  { %29 = dma.hbm_to_vmem [thread:$0]  %s25_s30, 128, %s27_s13, [#allocation3]  }
  0x12   :  { %s49_s15 = sshll.u32 %s1191_s14, 4  ;;  %s73_s0 = sshll.u32 %s1300_s4, 4  ;;  %s50_s15 = int_to_ptr.vmem [resolvable:$true] %s49_s15  ;;  %s74_s0 = int_to_ptr.hbm [resolvable:$true] %s73_s0 }
  0x13   :  { %55 = dma.hbm_to_vmem [thread:$0]  %s48_s11, 1024, %s50_s15, [#allocation5], %s1185_s17, %s1185_s17, %s1186_s18  }
  0x14   :  { %s99_s2 = sshll.u32 %s1302_s6, 4  ;;  %s1192_s1 = smov [#allocation9]   ;;  %s100_s2 = int_to_ptr.hbm [resolvable:$true] %s99_s2 }
  0x15   :  { %s75_s22 = sshll.u32 %s1192_s1, 4  ;;  %s1193_s3 = smov [#allocation12]   ;;  %s76_s22 = int_to_ptr.vmem [resolvable:$true] %s75_s22 }
  0x16   :  { %81 = dma.hbm_to_vmem [thread:$0]  %s74_s0, 1024, %s76_s22, [#allocation8], %s1185_s17, %s1185_s17, %s1186_s18  }
  0x17   :  { %s101_s4 = sshll.u32 %s1193_s3, 4  ;;  %s126_s25 = sshll.u32 %s1304_s8, 4  ;;  %s102_s4 = int_to_ptr.vmem [resolvable:$true] %s101_s4  ;;  %s127_s25 = int_to_ptr.hbm [resolvable:$true] %s126_s25 }
  0x18   :  { %107 = dma.hbm_to_vmem [thread:$0]  %s100_s2, 1024, %s102_s4, [#allocation11], %s1185_s17, %s1185_s17, %s1186_s18  }
  0x19   :  { %s1194_s6 = smov [#allocation15]  }
  0x1a   :  { %s128_s26 = sshll.u32 %s1194_s6, 4  ;;  %s129_s26 = int_to_ptr.vmem [resolvable:$true] %s128_s26 }
  0x1b   :  { %131 = dma.hbm_to_vmem [thread:$0]  %s127_s25, 128, %s129_s26, [#allocation14]  }
  0x1c   :  { %1174 = dma.done.wait [#allocation3], 128  }
  0x1d   :  { %1175 = vsyncadd [#allocation3], 4294967168 }
  0x1e   :  { %1176 = dma.done.wait [#allocation5], 1152  }
  0x1f   :  { %1177 = vsyncadd [#allocation5], 4294966144 }
  0x20   :  { %1178 = dma.done.wait [#allocation8], 2048  }
  0x21   :  { %1179 = vsyncadd [#allocation8], 4294965248 }
  0x22   :  { %1180 = dma.done.wait [#allocation11], 2048  }
  0x23   :  { %1181 = vsyncadd [#allocation11], 4294965248 }
  0x24   :  { %1182 = dma.done.wait [#allocation14], 1152  }
  0x25   :  { %1183 = vsyncadd [#allocation14], 4294966144  ;;  %v891_v0 = vld [vmem:[#allocation4] sm:$0xff]  ;;  %v169_v1 = vld [vmem:[#allocation2] sm:$0xff]  ;;  %vm181_vm0 = vcmask 130048  }
  0x26   :  { %v899_v2 = vld [vmem:[#allocation6 + $0x38] sm:$0xff]  ;;  %v170_v3 = vpack.c.bf16 %v169_v1, %v169_v1  ;;  %192 = vmatpush.bf16.msra.mxu0 %v891_v0  ;;  %v898_v4 = vld [vmem:[#allocation6 + $0x30] sm:$0xff]  ;;  %v897_v5 = vld [vmem:[#allocation6 + $0x28] sm:$0xff] }
  0x27   :  { %266 = vmatpush.bf16.msra.mxu1 %v899_v2  ;;  %v896_v6 = vld [vmem:[#allocation6 + $0x20] sm:$0xff]  ;;  %v895_v7 = vld [vmem:[#allocation6 + $0x18] sm:$0xff]  ;;  %v894_v8 = vld [vmem:[#allocation6 + $0x10] sm:$0xff] }
  0x28   :  { %v893_v9 = vld [vmem:[#allocation6 + $0x8] sm:$0xff]  ;;  %v892_v10 = vld [vmem:[#allocation6] sm:$0xff]  ;;  %v907_v11 = vld [vmem:[#allocation7 + $0x38] sm:$0xff] }
  0x29   :  { %698 = vmatmul.msk.bf16.vlgmr.msra.gmra.mxu0 %vm181_vm0, %v170_v3  ;;  %347 = vmatpush.bf16.msra.mxu2 %v907_v11  ;;  %v906_v12 = vld [vmem:[#allocation7 + $0x30] sm:$0xff]  ;;  %v905_v13 = vld [vmem:[#allocation7 + $0x28] sm:$0xff]  ;;  %v904_v14 = vld [vmem:[#allocation7 + $0x20] sm:$0xff] }
  0x2a   :  { %v903_v15 = vld [vmem:[#allocation7 + $0x18] sm:$0xff]  ;;  %v902_v16 = vld [vmem:[#allocation7 + $0x10] sm:$0xff]  ;;  %v951_v17 = vld [vmem:[#allocation15] ss:$0 sm:$0xff] }
  0x2b   :  { %267 = vmatpush.bf16.msra.mxu1 %v898_v4  ;;  %v901_v23 = vld [vmem:[#allocation7 + $0x8] sm:$0xff]  ;;  %v900_v24 = vld [vmem:[#allocation7] sm:$0xff]  ;;  %v915_v25 = vld [vmem:[#allocation9 + $0x38] sm:$0xff] }
  0x2c   :  { %428 = vmatpush.bf16.msra.mxu3 %v915_v25  ;;  %v914_v26 = vld [vmem:[#allocation9 + $0x30] sm:$0xff]  ;;  %v913_v27 = vld [vmem:[#allocation9 + $0x28] sm:$0xff]  ;;  %v912_v28 = vld [vmem:[#allocation9 + $0x20] sm:$0xff] }
  0x2d   :  { %348 = vmatpush.bf16.msra.mxu2 %v906_v12  ;;  %v911_v29 = vld [vmem:[#allocation9 + $0x18] sm:$0xff]  ;;  %v910_v30 = vld [vmem:[#allocation9 + $0x10] sm:$0xff]  ;;  %v952_v31 = vld [vmem:[#allocation15 + $0x1] ss:$0 sm:$0xff] }
  0x2e   :  { %v909_v37 = vld [vmem:[#allocation9 + $0x8] sm:$0xff]  ;;  %v908_v38 = vld [vmem:[#allocation9] sm:$0xff]  ;;  %v923_v39 = vld [vmem:[#allocation10 + $0x38] sm:$0xff] }
  0x2f   :  { %268 = vmatpush.bf16.msra.mxu1 %v897_v5  ;;  %509 = vmatpush.bf16.msrb.mxu0 %v923_v39  ;;  %v922_v40 = vld [vmem:[#allocation10 + $0x30] sm:$0xff]  ;;  %v921_v41 = vld [vmem:[#allocation10 + $0x28] sm:$0xff]  ;;  %v920_v42 = vld [vmem:[#allocation10 + $0x20] sm:$0xff] }
  0x30   :  { %429 = vmatpush.bf16.msra.mxu3 %v914_v26  ;;  %v919_v43 = vld [vmem:[#allocation10 + $0x18] sm:$0xff]  ;;  %v918_v44 = vld [vmem:[#allocation10 + $0x10] sm:$0xff]  ;;  %v953_v45 = vld [vmem:[#allocation15 + $0x2] ss:$0 sm:$0xff] }
  0x31   :  { %349 = vmatpush.bf16.msra.mxu2 %v905_v13  ;;  %v917_v51 = vld [vmem:[#allocation10 + $0x8] sm:$0xff]  ;;  %v916_v52 = vld [vmem:[#allocation10] sm:$0xff]  ;;  %v931_v53 = vld [vmem:[#allocation12 + $0x38] sm:$0xff] }
  0x32   :  { %v930_v54 = vld [vmem:[#allocation12 + $0x30] sm:$0xff]  ;;  %v929_v55 = vld [vmem:[#allocation12 + $0x28] sm:$0xff]  ;;  %v928_v56 = vld [vmem:[#allocation12 + $0x20] sm:$0xff] }
  0x33   :  { %269 = vmatpush.bf16.msra.mxu1 %v896_v6  ;;  %510 = vmatpush.bf16.msrb.mxu0 %v922_v40  ;;  %v927_v57 = vld [vmem:[#allocation12 + $0x18] sm:$0xff]  ;;  %v926_v58 = vld [vmem:[#allocation12 + $0x10] sm:$0xff]  ;;  %v954_v59 = vld [vmem:[#allocation15 + $0x3] ss:$0 sm:$0xff] }
  0x34   :  { %430 = vmatpush.bf16.msra.mxu3 %v913_v27  ;;  %v925_v1 = vld [vmem:[#allocation12 + $0x8] sm:$0xff]  ;;  %v924_v2 = vld [vmem:[#allocation12] sm:$0xff]  ;;  %v939_v3 = vld [vmem:[#allocation13 + $0x38] sm:$0xff] }
  0x35   :  { %350 = vmatpush.bf16.msra.mxu2 %v904_v14  ;;  %v938_v4 = vld [vmem:[#allocation13 + $0x30] sm:$0xff]  ;;  %v937_v5 = vld [vmem:[#allocation13 + $0x28] sm:$0xff]  ;;  %v936_v6 = vld [vmem:[#allocation13 + $0x20] sm:$0xff] }
  0x37   :  { %270 = vmatpush.bf16.msra.mxu1 %v895_v7  ;;  %511 = vmatpush.bf16.msrb.mxu0 %v921_v41  ;;  %v935_v7 = vld [vmem:[#allocation13 + $0x18] sm:$0xff] }
  0x38   :  { %431 = vmatpush.bf16.msra.mxu3 %v912_v28 }
  0x39   :  { %351 = vmatpush.bf16.msra.mxu2 %v903_v15  ;;  %v933_v15 = vld [vmem:[#allocation13 + $0x8] sm:$0xff] }
  0x3b   :  { %271 = vmatpush.bf16.msra.mxu1 %v894_v8  ;;  %512 = vmatpush.bf16.msrb.mxu0 %v920_v42  ;;  %v934_v8 = vld [vmem:[#allocation13 + $0x10] sm:$0xff] }
  0x3c   :  { %432 = vmatpush.bf16.msra.mxu3 %v911_v29 }
  0x3d   :  { %352 = vmatpush.bf16.msra.mxu2 %v902_v16  ;;  %v932_v16 = vld [vmem:[#allocation13] sm:$0xff] }
  0x3f   :  { %272 = vmatpush.bf16.msra.mxu1 %v893_v9  ;;  %513 = vmatpush.bf16.msrb.mxu0 %v919_v43  ;;  %v955_v9 = vld [vmem:[#allocation15 + $0x4] ss:$0 sm:$0xff] }
  0x40   :  { %433 = vmatpush.bf16.msra.mxu3 %v910_v30 }
  0x41   :  { %353 = vmatpush.bf16.msra.mxu2 %v901_v23  ;;  %v957_v23 = vld [vmem:[#allocation15 + $0x6] ss:$0 sm:$0xff] }
  0x43   :  { %273 = vmatpush.bf16.msra.mxu1 %v892_v10  ;;  %514 = vmatpush.bf16.msrb.mxu0 %v918_v44 }
  0x44   :  { %434 = vmatpush.bf16.msra.mxu3 %v909_v37 }
  0x45   :  { %354 = vmatpush.bf16.msra.mxu2 %v900_v24 }
  0x47   :  { %515 = vmatpush.bf16.msrb.mxu0 %v917_v51  ;;  %590 = vmatpush.bf16.msrb.mxu1 %v931_v53 }
  0x48   :  { %435 = vmatpush.bf16.msra.mxu3 %v908_v38 }
  0x49   :  { %671 = vmatpush.bf16.msrb.mxu2 %v939_v3 }
  0x4b   :  { %516 = vmatpush.bf16.msrb.mxu0 %v916_v52  ;;  %591 = vmatpush.bf16.msrb.mxu1 %v930_v54 }
  0x4d   :  { %672 = vmatpush.bf16.msrb.mxu2 %v938_v4 }
  0x4f   :  { %592 = vmatpush.bf16.msrb.mxu1 %v929_v55 }
  0x51   :  { %673 = vmatpush.bf16.msrb.mxu2 %v937_v5 }
  0x53   :  { %593 = vmatpush.bf16.msrb.mxu1 %v928_v56 }
  0x55   :  { %674 = vmatpush.bf16.msrb.mxu2 %v936_v6 }
  0x57   :  { %594 = vmatpush.bf16.msrb.mxu1 %v927_v57 }
  0x59   :  { %675 = vmatpush.bf16.msrb.mxu2 %v935_v7 }
  0x5b   :  { %595 = vmatpush.bf16.msrb.mxu1 %v926_v58 }
  0x5d   :  { %676 = vmatpush.bf16.msrb.mxu2 %v934_v8 }
  0x5f   :  { %596 = vmatpush.bf16.msrb.mxu1 %v925_v1 }
  0x61   :  { %677 = vmatpush.bf16.msrb.mxu2 %v933_v15 }
  0x63   :  { %597 = vmatpush.bf16.msrb.mxu1 %v924_v2 }
  0x65   :  { %678 = vmatpush.bf16.msrb.mxu2 %v932_v16 }
  0xa6   :  { %v194_v18 = vpop.f32.mrf.mxu0 }
  0xa7   :  { %v195_v19 = vadd.f32 %v951_v17, %v194_v18  ;;  %v956_v17 = vld [vmem:[#allocation15 + $0x5] ss:$0 sm:$0xff] }
  0xa9   :  { %v198_v20 = vmax.f32 %v195_v19, 0.0 }
  0xab   :  { %v199_v21 = vpack.c.bf16 %v198_v20, %v198_v20 }
  0xad   :  { %274 = vmatmul.bf16.vlgmr.msra.gmra.mxu1 %v199_v21 }
  0xae   :  { %v196_v22 = vpop.f32.mrf.mxu0 }
 0x12a   :  { %v275_v32 = vpop.f32.mrf.mxu1 }
 0x12b   :  { %v276_v33 = vadd.f32 %v952_v31, %v275_v32 }
 0x12d   :  { %v279_v34 = vmax.f32 %v276_v33, 0.0 }
 0x12f   :  { %v280_v35 = vpack.c.bf16 %v279_v34, %v279_v34 }
 0x131   :  { %355 = vmatmul.bf16.vlgmr.msra.gmra.mxu2 %v280_v35 }
 0x132   :  { %v277_v36 = vpop.f32.mrf.mxu1 }
 0x1b4   :  { %v356_v46 = vpop.f32.mrf.mxu2 }
 0x1b5   :  { %v357_v47 = vadd.f32 %v953_v45, %v356_v46 }
 0x1b7   :  { %v360_v48 = vmax.f32 %v357_v47, 0.0 }
 0x1b9   :  { %v361_v49 = vpack.c.bf16 %v360_v48, %v360_v48 }
 0x1bb   :  { %436 = vmatmul.bf16.vlgmr.msra.gmra.mxu3 %v361_v49 }
 0x1bc   :  { %v358_v50 = vpop.f32.mrf.mxu2 }
 0x23e   :  { %v437_v60 = vpop.f32.mrf.mxu3 }
 0x23f   :  { %v438_v61 = vadd.f32 %v954_v59, %v437_v60 }
 0x241   :  { %v441_v62 = vmax.f32 %v438_v61, 0.0 }
 0x243   :  { %v442_v63 = vpack.c.bf16 %v441_v62, %v441_v62 }
 0x245   :  { %517 = vmatmul.bf16.vlgmr.msrb.gmra.mxu0 %v442_v63 }
 0x246   :  { %v439_v0 = vpop.f32.mrf.mxu3 }
 0x2c2   :  { %v518_v10 = vpop.f32.mrf.mxu0 }
 0x2c3   :  { %v519_v11 = vadd.f32 %v955_v9, %v518_v10 }
 0x2c5   :  { %v522_v12 = vmax.f32 %v519_v11, 0.0 }
 0x2c7   :  { %v523_v13 = vpack.c.bf16 %v522_v12, %v522_v12 }
 0x2c9   :  { %598 = vmatmul.bf16.vlgmr.msrb.gmra.mxu1 %v523_v13 }
 0x2ca   :  { %v520_v14 = vpop.f32.mrf.mxu0 }
 0x346   :  { %v599_v18 = vpop.f32.mrf.mxu1 }
 0x347   :  { %v600_v19 = vadd.f32 %v956_v17, %v599_v18 }
 0x349   :  { %v603_v20 = vmax.f32 %v600_v19, 0.0 }
 0x34b   :  { %v604_v21 = vpack.c.bf16 %v603_v20, %v603_v20 }
 0x34d   :  { %679 = vmatmul.bf16.vlgmr.msrb.gmra.mxu2 %v604_v21 }
 0x34e   :  { %v601_v22 = vpop.f32.mrf.mxu1 }
 0x3d0   :  { %v680_v24 = vpop.f32.mrf.mxu2 }
 0x3d1   :  { %v681_v25 = vadd.f32 %v957_v23, %v680_v24 }
 0x3d3   :  { %684 = vst [vmem:[%s1305_s9] sm:$0xff] %v681_v25 }
 0x3d8   :  { %v682_v26 = vpop.f32.mrf.mxu2 }
 0x3d9   :  { %689 = vsyncpa [#allocation3], 1 }
 0x3da   :  { %690 = vsyncpa [#allocation5], 1 }
 0x3db   :  { %691 = vsyncpa [#allocation8], 1 }
 0x3dc   :  { %692 = vsyncpa [#allocation11], 1 }
 0x3dd   :  { %693 = vsyncpa [#allocation14], 1 }

</bundles_post_ra>
